<compile_context>
chip_gen: v7x
topology: tpu7x:2x2x1
jax: 0.10.0
libtpu: 0.0.40
codegen_flags: <defaults>
</compile_context>

<pallas_src>
import functools
import numpy as np
import jax
import jax.numpy as jnp
from jax.experimental import pallas as pl
from jax.experimental.pallas import tpu as pltpu

_C = 1.0 / np.sqrt(2.0)


def _haar_col_matrix(W):
    """Fused column-transform weight [M_low_1 | M_high_1], shape (W, W).

    Column k <  W/2: low-pass  pair (2k, 2k+1) -> (+c, +c)
    Column k >= W/2: high-pass pair (2k, 2k+1) -> (+c, -c)
    """
    m = np.zeros((W, W), np.float32)
    for k in range(W // 2):
        m[2 * k, k] = _C
        m[2 * k + 1, k] = _C
        m[2 * k, W // 2 + k] = _C
        m[2 * k + 1, W // 2 + k] = -_C
    return jnp.asarray(m)


def _dwt_kernel(x_ref, m_ref, low_ref, high_ref, *, rows_half):
    # x_ref: (B*H, W) rows of B consecutive images; m_ref: (W, W) fused weight.
    x_even = x_ref[pl.ds(0, rows_half, stride=2), :]   # rows 0,2,4,...  (VPU path)
    x_odd = x_ref[pl.ds(1, rows_half, stride=2), :]    # rows 1,3,5,...
    L = _C * (x_even + x_odd)                          # (B*H/2, W)
    Hh = _C * (x_even - x_odd)                         # (B*H/2, W)

    m = m_ref[...]                                     # (W, W) = [low | high]
    low_ref[...] = jnp.dot(L, m, preferred_element_type=jnp.float32).astype(low_ref.dtype)
    high_ref[...] = jnp.dot(Hh, m, preferred_element_type=jnp.float32).astype(high_ref.dtype)


def _pick_batch(NC, H, W, target_bytes=2 << 20):
    """Images per grid step: largest divisor of NC whose block fits target_bytes,
    preferring a grid of length >= 2 (keeps both v7x TensorCores busy)."""
    max_b = max(1, target_bytes // (H * W * 4))
    divs = [d for d in range(1, NC + 1) if NC % d == 0]
    cands = ([d for d in divs if d <= max_b and NC // d >= 2]
             or [d for d in divs if d <= max_b]
             or [1])
    return max(cands)


def my_downsampling_dwt(x):
    """x: (N, C, H, W) -> (LL, LH, HL, HH, x), each sub-band (N, C, H/2, W/2)."""
    N, C, H, W = x.shape
    assert H % 2 == 0 and W % 2 == 0
    NC = N * C
    B = _pick_batch(NC, H, W)
    grid_len = NC // B

    m_col = _haar_col_matrix(W)
    x_rows = x.reshape(NC * H, W)

    rows_in = B * H
    rows_out = B * H // 2
    out_shape = jax.ShapeDtypeStruct((NC * H // 2, W), x.dtype)

    kernel = functools.partial(_dwt_kernel, rows_half=rows_out)

    itemsize = int(jnp.dtype(x.dtype).itemsize)
    bytes_accessed = 2 * NC * H * W * itemsize          # read x + write low/high
    flops = 2 * 2 * (NC * H // 2) * W * W               # two (B*H/2,W)@(W,W) per step total

    low, high = pl.pallas_call(
        kernel,
        out_shape=(out_shape, out_shape),
        grid=(grid_len,),
        in_specs=[
            pl.BlockSpec((rows_in, W), lambda i: (i, 0)),
            pl.BlockSpec((W, W), lambda i: (0, 0)),      # constant fused weight
        ],
        out_specs=(
            pl.BlockSpec((rows_out, W), lambda i: (i, 0)),
            pl.BlockSpec((rows_out, W), lambda i: (i, 0)),
        ),
        compiler_params=pltpu.CompilerParams(
            dimension_semantics=("parallel",)),
        cost_estimate=pl.CostEstimate(
            flops=flops, transcendentals=0, bytes_accessed=bytes_accessed),
    )(x_rows, m_col)

    W2 = W // 2
    low = low.reshape(N, C, H // 2, W)
    high = high.reshape(N, C, H // 2, W)
    LL, LH = low[..., :W2], low[..., W2:]
    HL, HH = high[..., :W2], high[..., W2:]
    return LL, LH, HL, HH, x


# ----------------------- plain-JAX reference (for check) -----------------------

def _haar_dwt_matrices(H, W):
    """Deterministic Haar analysis matrices, matching DWT_2D.get_matrix()."""
    c = 1.0 / np.sqrt(2.0)
    ml0 = np.zeros((H // 2, H), np.float32)
    mh0 = np.zeros((H // 2, H), np.float32)
    for i in range(H // 2):
        ml0[i, 2 * i] = c
        ml0[i, 2 * i + 1] = c
        mh0[i, 2 * i] = c
        mh0[i, 2 * i + 1] = -c
    ml1 = np.zeros((W // 2, W), np.float32)
    mh1 = np.zeros((W // 2, W), np.float32)
    for j in range(W // 2):
        ml1[j, 2 * j] = c
        ml1[j, 2 * j + 1] = c
        mh1[j, 2 * j] = c
        mh1[j, 2 * j + 1] = -c
    return (jnp.asarray(ml0), jnp.asarray(mh0),
            jnp.asarray(ml1.T), jnp.asarray(mh1.T))


def _reference(x):
    N, C, H, W = x.shape
    ml0, mh0, ml1, mh1 = _haar_dwt_matrices(H, W)
    L = jnp.einsum('rh,nchw->ncrw', ml0, x)
    Hh = jnp.einsum('rh,nchw->ncrw', mh0, x)
    LL = jnp.einsum('ncrw,wk->ncrk', L, ml1)
    LH = jnp.einsum('ncrw,wk->ncrk', L, mh1)
    HL = jnp.einsum('ncrw,wk->ncrk', Hh, ml1)
    HH = jnp.einsum('ncrw,wk->ncrk', Hh, mh1)
    return LL, LH, HL, HH, x


if __name__ == "__main__":
    key = jax.random.PRNGKey(0)
    N, C, H, W = 2, 4, 16, 16
    x = jax.random.normal(key, (N, C, H, W), dtype=jnp.float32)

    outs = my_downsampling_dwt(x)
    outs = jax.block_until_ready(outs)

    refs = _reference(x)
    for o, r in zip(outs, refs):
        assert o.shape == r.shape, (o.shape, r.shape)
        assert bool(jnp.allclose(o, r, atol=1e-5, rtol=1e-5)), "Pallas DWT mismatch vs reference"
    print("KERNEL_OK")
</pallas_src>

<mosaic_0001>
module attributes {stable_mosaic.version = 11 : i64} {
  func.func @_dwt_kernel(%arg0: i32, %arg1: memref<64x16xf32, #tpu.memory_space<vmem>>, %arg2: memref<16x16xf32, #tpu.memory_space<vmem>>, %arg3: memref<32x16xf32, #tpu.memory_space<vmem>>, %arg4: memref<32x16xf32, #tpu.memory_space<vmem>>) attributes {dimension_semantics = [#tpu.dimension_semantics<parallel>], iteration_bounds = array<i64: 2>, scalar_prefetch = 0 : i64, scratch_operands = 0 : i64, tpu.core_type = #tpu.core_type<tc>, window_params = [{transform_indices = @transform_0, window_bounds = array<i64: 64, 16>}, {pipeline_mode = #tpu.pipeline_mode<synchronous>, transform_indices = @transform_1, window_bounds = array<i64: 16, 16>}, {transform_indices = @transform_2, window_bounds = array<i64: 32, 16>}, {transform_indices = @transform_3, window_bounds = array<i64: 32, 16>}]} {
    %c0 = arith.constant 0 : index
    %c0_0 = arith.constant 0 : index
    %0 = tpu.strided_load %arg1[%c0, %c0_0] {strides = array<i32: 2, 1>} : memref<64x16xf32, #tpu.memory_space<vmem>>, vector<32x16xf32>
    %c1 = arith.constant 1 : index
    %c0_1 = arith.constant 0 : index
    %1 = tpu.strided_load %arg1[%c1, %c0_1] {strides = array<i32: 2, 1>} : memref<64x16xf32, #tpu.memory_space<vmem>>, vector<32x16xf32>
    %2 = arith.addf %0, %1 : vector<32x16xf32>
    %cst = arith.constant 0.707106769 : f32
    %3 = vector.broadcast %cst : f32 to vector<32x16xf32>
    %4 = arith.mulf %3, %2 : vector<32x16xf32>
    %5 = arith.subf %0, %1 : vector<32x16xf32>
    %cst_2 = arith.constant 0.707106769 : f32
    %6 = vector.broadcast %cst_2 : f32 to vector<32x16xf32>
    %7 = arith.mulf %6, %5 : vector<32x16xf32>
    %c0_3 = arith.constant 0 : index
    %c0_4 = arith.constant 0 : index
    %8 = vector.load %arg2[%c0_3, %c0_4] : memref<16x16xf32, #tpu.memory_space<vmem>>, vector<16x16xf32>
    %cst_5 = arith.constant dense<0.000000e+00> : vector<32x16xf32>
    %9 = tpu.matmul %4, %8, %cst_5 {dimension_numbers = #tpu.dot_dimension_numbers<[1], [0], [0], [1], [0, 0, 1, 1], [], []>} : vector<32x16xf32>, vector<16x16xf32>, vector<32x16xf32> -> vector<32x16xf32>
    %c0_6 = arith.constant 0 : index
    %c0_7 = arith.constant 0 : index
    %10 = vector.load %arg3[%c0_6, %c0_7] : memref<32x16xf32, #tpu.memory_space<vmem>>, vector<32x16xf32>
    tpu.vector_store %arg3[%c0_6, %c0_7], %9 {strides = array<i32>} : memref<32x16xf32, #tpu.memory_space<vmem>>, vector<32x16xf32>,
    %cst_8 = arith.constant dense<0.000000e+00> : vector<32x16xf32>
    %11 = tpu.matmul %7, %8, %cst_8 {dimension_numbers = #tpu.dot_dimension_numbers<[1], [0], [0], [1], [0, 0, 1, 1], [], []>} : vector<32x16xf32>, vector<16x16xf32>, vector<32x16xf32> -> vector<32x16xf32>
    %c0_9 = arith.constant 0 : index
    %c0_10 = arith.constant 0 : index
    %12 = vector.load %arg4[%c0_9, %c0_10] : memref<32x16xf32, #tpu.memory_space<vmem>>, vector<32x16xf32>
    tpu.vector_store %arg4[%c0_9, %c0_10], %11 {strides = array<i32>} : memref<32x16xf32, #tpu.memory_space<vmem>>, vector<32x16xf32>,
    return
  }
  func.func @transform_0(%arg0: i32) -> (i32, i32) {
    %c0_i32 = arith.constant 0 : i32
    %c0_i32_0 = arith.constant 0 : i32
    return %arg0, %c0_i32 : i32, i32
  }
  func.func @transform_1(%arg0: i32) -> (i32, i32) {
    %c0_i32 = arith.constant 0 : i32
    %c0_i32_0 = arith.constant 0 : i32
    %c0_i32_1 = arith.constant 0 : i32
    return %c0_i32, %c0_i32_0 : i32, i32
  }
  func.func @transform_2(%arg0: i32) -> (i32, i32) {
    %c0_i32 = arith.constant 0 : i32
    %c0_i32_0 = arith.constant 0 : i32
    return %arg0, %c0_i32 : i32, i32
  }
  func.func @transform_3(%arg0: i32) -> (i32, i32) {
    %c0_i32 = arith.constant 0 : i32
    %c0_i32_0 = arith.constant 0 : i32
    return %arg0, %c0_i32 : i32, i32
  }
}

</mosaic_0001>

<bundles_post_ra>
// kernel: tpu_custom_call.1
= control target key start
LH: loop header
LB: loop body
LE: loop exit
PB: predicated region body
PF: predicated region fallthrough
CT: control target
= control target key end

     0   :  { %s618_s12 = smov 0   ;;  %s664_s0 = inlined_call_operand.vmem [shape: f32[128,16], index: 0, kind: input, shape index: {}]   ;;  %s665_s1 = inlined_call_operand.vmem [shape: f32[16,16], index: 1, kind: input, shape index: {}]   ;;  %s666_s2 = inlined_call_operand.vmem [shape: f32[64,16], index: 2, kind: output, shape index: {0}]   ;;  %s667_s3 = inlined_call_operand.vmem [shape: f32[64,16], index: 3, kind: output, shape index: {1}]  }
   0x1 LB: > { %s514_s13 = sadd.s32 4294967295, %s596_s12   ;;  %p518_p0 = scmp.ge.s32.totalorder %s596_s12, 1  ;;  %s596_s12 = sphi %s618_s12, %s14_s12  }
   0x2   : > { %p141_p1 = scmp.lt.s32.totalorder %s596_s12, 3 }
   0x4   : > { %p142_p2 = pnand %p518_p0, %p141_p1 }
   0x5   : > { %v219_v0 = vld [vmem:[%s665_s1] sm:$0xff] (!%p142_p2)  ;;  %v220_v1 = vld [vmem:[%s665_s1 + $0x8] sm:$0xff] (!%p142_p2)  ;;  %s519_s18 = sshll.u32 (!%p142_p2), %s514_s13, 3  ;;  %vm221_vm0 = vcmask (!%p142_p2), 130048   ;;  %s521_s23 = sshll.u32 (!%p142_p2), %s514_s13, 2 }
   0x6   : > { %145 = sbr.rel (%p142_p2) target bundleno = 240 (0xf0), region = 28  ;;  %v574_v2 = vpack.c.bf16 (!%p142_p2), %v220_v1, %v219_v0  ;;  %p171_p3 = scmp.lt.s32.totalorder (!%p142_p2), %s519_s18, 15 }
   0x7   : > { %p177_p4 = scmp.lt.s32.totalorder (!%p142_p2), %s521_s23, 7 }
   0x8   : > { %575 = vmatprep.subr.bf16.mxu0 (!%p142_p2), %v574_v2  ;;  %579 = vmatprep.subr.bf16.mxu1 (!%p142_p2), %v574_v2 }
   0x9   : > { %577 = vmatpush3.bf16.msra.mxu0 (!%p142_p2), %v574_v2  ;;  %581 = vmatpush3.bf16.msra.mxu1 (!%p142_p2), %v574_v2 }
   0xd   : > { %s669_s18 = smov (!%p171_p3, %s519_s18), 15  ;;  %s671_s23 = smov (!%p177_p4, %s521_s23), 7 }
   0xe   : > { %s520_s19 = sshll.u32 %s669_s18, 3  ;;  %s522_s24 = sshll.u32 %s671_s23, 3 }
   0xf   : > { %s174_s22 = scalar_lea.vmem %s664_s0, %s520_s19  ;;  %s180_s27 = scalar_lea.vmem %s666_s2, %s522_s24 }
  0x10   : > { %v188_v3 = vld [vmem:[%s174_s22] ss:$2 sm:$0xff]  ;;  %v528_v4 = vld [vmem:[%s174_s22 + $0x1] ss:$2 sm:$0xff]  ;;  %v525_v5 = vld [vmem:[%s174_s22 + $0x10] ss:$2 sm:$0xff]  ;;  %s186_s30 = scalar_lea.vmem %s667_s3, %s522_s24 }
  0x11   : > { %v203_v6 = vadd.f32 %v528_v4, %v188_v3  ;;  %v211_v7 = vsub.f32 %v188_v3, %v528_v4  ;;  %v529_v8 = vld [vmem:[%s174_s22 + $0x11] ss:$2 sm:$0xff]  ;;  %v526_v9 = vld [vmem:[%s174_s22 + $0x20] ss:$2 sm:$0xff]  ;;  %v530_v10 = vld [vmem:[%s174_s22 + $0x21] ss:$2 sm:$0xff] }
  0x12   : > { %v204_v11 = vadd.f32 %v529_v8, %v525_v5  ;;  %v212_v12 = vsub.f32 %v525_v5, %v529_v8  ;;  %v205_v13 = vadd.f32 %v530_v10, %v526_v9  ;;  %v213_v14 = vsub.f32 %v526_v9, %v530_v10  ;;  %v527_v15 = vld [vmem:[%s174_s22 + $0x30] ss:$2 sm:$0xff]  ;;  %v531_v16 = vld [vmem:[%s174_s22 + $0x31] ss:$2 sm:$0xff] }
  0x13   : > { %v207_v17 = vmul.f32 0.70710677, %v203_v6  ;;  %v215_v18 = vmul.f32 0.70710677, %v211_v7  ;;  %v206_v19 = vadd.f32 %v531_v16, %v527_v15  ;;  %v214_v20 = vsub.f32 %v527_v15, %v531_v16 }
  0x14   : > { %v208_v21 = vmul.f32 0.70710677, %v204_v11  ;;  %v216_v22 = vmul.f32 0.70710677, %v212_v12  ;;  %v209_v23 = vmul.f32 0.70710677, %v205_v13 }
  0x15   : > { %558 = vmatprep.mubr.msk.f32.mxu0 %vm221_vm0, %v207_v17  ;;  %568 = vmatprep.mubr.msk.f32.mxu1 %vm221_vm0, %v215_v18  ;;  %v217_v24 = vmul.f32 0.70710677, %v213_v14  ;;  %v210_v25 = vmul.f32 0.70710677, %v206_v19  ;;  %v218_v26 = vmul.f32 0.70710677, %v214_v20 }
  0x16   : > { %559 = vmatmul.mubr.msk.f32.vlgmr.msra.gmra.mrb[0].mxu0 %vm221_vm0, %v208_v21  ;;  %569 = vmatmul.mubr.msk.f32.vlgmr.msra.gmra.mrb[0].mxu1 %vm221_vm0, %v216_v22 }
  0x17   : > { %561 = vmatprep.mubr.msk.f32.mxu0 %vm221_vm0, %v209_v23  ;;  %571 = vmatprep.mubr.msk.f32.mxu1 %vm221_vm0, %v217_v24 }
  0x1a   : > { %562 = vmatmul.mubr.msk.f32.gmra.mrb[2].mxu0 %vm221_vm0, %v210_v25  ;;  %572 = vmatmul.mubr.msk.f32.gmra.mrb[2].mxu1 %vm221_vm0, %v218_v26 }
  0xe9   : > { %v560_v27 = vpop.f32.mrb[0].mxu0  ;;  %v570_v28 = vpop.f32.mrb[0].mxu1 }
  0xea   : > { %v300_v29 = vpop.f32.mrb[1].mxu0  ;;  %v401_v30 = vpop.f32.mrb[1].mxu1  ;;  %320 = vst.msk [vmem:[%s180_s27 + $0x8] sm:$0xff] %vm221_vm0, %v560_v27  ;;  %421 = vst.msk [vmem:[%s186_s30 + $0x8] sm:$0xff] %vm221_vm0, %v570_v28 }
  0xeb   : > { %319 = vst.msk [vmem:[%s180_s27] sm:$0xff] %vm221_vm0, %v300_v29  ;;  %420 = vst.msk [vmem:[%s186_s30] sm:$0xff] %vm221_vm0, %v401_v30 }
  0xed   : > { %v563_v31 = vpop.f32.mrb[2].mxu0  ;;  %v573_v32 = vpop.f32.mrb[2].mxu1 }
  0xee   : > { %v310_v33 = vpop.f32.mrb[3].mxu0  ;;  %v411_v34 = vpop.f32.mrb[3].mxu1  ;;  %322 = vst.msk [vmem:[%s180_s27 + $0x18] sm:$0xff] %vm221_vm0, %v563_v31  ;;  %423 = vst.msk [vmem:[%s186_s30 + $0x18] sm:$0xff] %vm221_vm0, %v573_v32 }
  0xef   : > { %321 = vst.msk [vmem:[%s180_s27 + $0x10] sm:$0xff] %vm221_vm0, %v310_v33  ;;  %422 = vst.msk [vmem:[%s186_s30 + $0x10] sm:$0xff] %vm221_vm0, %v411_v34 }
  0xf0 PF: > { %s14_s12 = sadd.s32 1, %s596_s12  }
  0xf1   : > { %p11_p5 = scmp.ge.s32.totalorder %s14_s12, 4  }
  0xf3   :  { %13 = sbr.rel (!%p11_p5) target bundleno = 1 (0x1), region = 77 }

</bundles_post_ra>
